<compile_context>
chip_gen: v5e
topology: v5e:2x2
jax: 0.10.0
libtpu: 0.0.40
codegen_flags: <defaults>
</compile_context>

<pallas_src>
import functools

import jax
import jax.numpy as jnp
from jax.experimental import pallas as pl
from jax.experimental.pallas import tpu as pltpu


def _round_up(a: int, m: int) -> int:
    return ((a + m - 1) // m) * m


def _center_loss_kernel(labels_ref, x_ref, centers_ref, out_ref, acc_ref, *,
                        batch_size, tile_rows, num_classes_padded):
    c = pl.program_id(0)          # core-split index ("parallel")
    t = pl.program_id(1)          # batch-tile index ("arbitrary" reduction)
    nt = pl.num_programs(1)

    @pl.when(t == 0)
    def _():
        acc_ref[...] = jnp.zeros_like(acc_ref)
        out_ref[...] = jnp.zeros_like(out_ref)

    x = x_ref[...].astype(jnp.float32)                              # (TB, Dp)
    labels = labels_ref[...]                                        # (TB, 1) i32

    # --- one-hot gather of the needed centers rows on the MXU ---
    cls = jax.lax.broadcasted_iota(jnp.int32,
                                   (tile_rows, num_classes_padded), 1)
    one_hot = (labels == cls).astype(jnp.float32)                   # (TB, Cp)
    gathered = jnp.dot(one_hot, centers_ref[...].astype(jnp.float32),
                       precision=jax.lax.Precision.HIGHEST,
                       preferred_element_type=jnp.float32)          # (TB, Dp)

    # --- squared distance, with padded batch rows masked out ---
    diff = x - gathered
    sq = diff * diff
    row = (c * nt + t) * tile_rows + jax.lax.broadcasted_iota(
        jnp.int32, (tile_rows, 1), 0)
    sq = jnp.where(row < batch_size, sq, 0.0)

    # lane-dense wide accumulator; only a sublane reduce per step
    acc_ref[...] += jnp.sum(sq, axis=0, keepdims=True)              # (1, Dp)

    # --- finalize this core-half's partial sum (cross-lane reduce once) ---
    @pl.when(t == nt - 1)
    def _():
        partial = jnp.sum(acc_ref[...])
        out_ref[...] = jnp.full((1, 1, 128), partial, dtype=jnp.float32)


def center_wo_params_loss(x, centers, labels, *, tile_rows=512, core_split=2):
    """x: (B, D) float, centers: (C, D) float, labels: (B,) int -> scalar f32."""
    b, d = x.shape
    cnum, d2 = centers.shape
    assert d == d2, "feature dims of x and centers must match"

    x_item = jnp.dtype(x.dtype).itemsize
    c_item = jnp.dtype(centers.dtype).itemsize

    d_pad = _round_up(d, 128)
    c_pad = _round_up(cnum, 128)

    # Table-resident design: the (padded, possibly double-buffered) centers
    # table must fit comfortably in VMEM on every generation (v7x has 64 MiB).
    centers_vmem_bytes = 2 * c_pad * d_pad * c_item
    assert centers_vmem_bytes <= (16 << 20), (
        "centers table too large for the VMEM-resident kernel")

    # --- tile selection: big tiles for HBM roofline, capped by a VMEM budget ---
    vmem_budget = 28 << 20                       # safe on v5e/v6e/v7x
    tb = _round_up(min(tile_rows, max(b, 8)), 8)

    def _tile_bytes(tb_):
        x_bufs = 2 * tb_ * d_pad * x_item                 # double-buffered x
        lbl_bufs = 2 * tb_ * 4                            # double-buffered labels
        temps = tb_ * (c_pad + 3 * d_pad) * 4             # one-hot + diff/sq/gather
        return x_bufs + lbl_bufs + temps + centers_vmem_bytes + d_pad * 4

    while tb > 8 and _tile_bytes(tb) > vmem_budget:
        tb = max(8, _round_up(tb // 2, 8))

    n_split = core_split                          # leading "parallel" axis (v7x 2 TCs)
    b_pad = _round_up(b, n_split * tb)
    nt = b_pad // (n_split * tb)

    # Clamp untrusted labels once, outside the kernel (the PyTorch module
    # would index out-of-bounds instead).
    labels2 = jnp.clip(labels.astype(jnp.int32), 0, cnum - 1).reshape(-1, 1)
    if b_pad != b:
        x = jnp.pad(x, ((0, b_pad - b), (0, 0)))
        labels2 = jnp.pad(labels2, ((0, b_pad - b), (0, 0)))
    if d_pad != d:
        x = jnp.pad(x, ((0, 0), (0, d_pad - d)))
        centers = jnp.pad(centers, ((0, 0), (0, d_pad - d)))
    if c_pad != cnum:
        centers = jnp.pad(centers, ((0, c_pad - cnum), (0, 0)))

    kernel = functools.partial(
        _center_loss_kernel, batch_size=b, tile_rows=tb,
        num_classes_padded=c_pad)

    grid_spec = pltpu.PrefetchScalarGridSpec(
        num_scalar_prefetch=0,
        grid=(n_split, nt),
        in_specs=[
            # labels tile (int32, lane dim == full array dim)
            pl.BlockSpec((tb, 1), lambda c, t: (c * nt + t, 0)),
            # x tile, auto-pipelined
            pl.BlockSpec((tb, d_pad), lambda c, t: (c * nt + t, 0)),
            # centers table: constant block index -> DMA'd once, VMEM-resident
            pl.BlockSpec((c_pad, d_pad), lambda c, t: (0, 0)),
        ],
        # one lane-dense partial-sum block per core half
        out_specs=pl.BlockSpec((1, 1, 128), lambda c, t: (c, 0, 0)),
        scratch_shapes=[pltpu.VMEM((1, d_pad), jnp.float32)],   # wide accumulator
    )

    cost = pl.CostEstimate(
        flops=3 * b * d + 2 * b_pad * c_pad * d_pad,   # elementwise + one-hot matmul
        transcendentals=0,
        bytes_accessed=(b_pad * d_pad * x_item + c_pad * d_pad * c_item
                        + b_pad * 4 + n_split * 128 * 4),
    )

    out = pl.pallas_call(
        kernel,
        out_shape=jax.ShapeDtypeStruct((n_split, 1, 128), jnp.float32),
        grid_spec=grid_spec,
        compiler_params=pltpu.CompilerParams(
            dimension_semantics=("parallel", "arbitrary"),
            vmem_limit_bytes=64 << 20),
        cost_estimate=cost,
    )(labels2, x, centers)

    # combine per-core partial sums and apply the 1/(2*batch) scale
    return jnp.sum(out[:, 0, 0]) * (1.0 / (2.0 * b))


def center_wo_params_loss_ref(x, centers, labels):
    """Pure-JAX reference mirroring the PyTorch forward."""
    gathered = centers[labels]                          # (B, D)
    loss = jnp.sum((x - gathered) ** 2)
    return (loss / 2.0) / x.shape[0]


if __name__ == "__main__":
    # Small deterministic setup (the module loads centers from disk; here they
    # are initialized deterministically instead).
    key = jax.random.PRNGKey(0)

    def run_case(b, d, c, tile_rows):
        kx, kc, kl = jax.random.split(jax.random.fold_in(key, b * 1000 + d), 3)
        x = jax.random.normal(kx, (b, d), dtype=jnp.float32)
        centers = jax.random.normal(kc, (c, d), dtype=jnp.float32)
        labels = jax.random.randint(kl, (b,), 0, c, dtype=jnp.int32)

        ref = jax.block_until_ready(center_wo_params_loss_ref(x, centers, labels))
        out = jax.block_until_ready(
            center_wo_params_loss(x, centers, labels, tile_rows=tile_rows))
        assert jnp.allclose(out, ref, rtol=1e-5, atol=1e-5), (
            b, d, c, tile_rows, out, ref)

    # module-spec shapes: x (batch_size, feature_dim), labels (batch_size,)
    run_case(b=10, d=32, c=12, tile_rows=8)     # batch/feature/class padding + masking
    run_case(b=10, d=32, c=12, tile_rows=512)   # default tiling path
    run_case(b=70, d=96, c=200, tile_rows=16)   # multi-tile reduction, C > 128

    print("KERNEL_OK")
</pallas_src>

<mosaic_0001>
module attributes {stable_mosaic.version = 11 : i64} {
  func.func @_center_loss_kernel(%arg0: i32, %arg1: i32, %arg2: memref<8x1xi32, #tpu.memory_space<vmem>>, %arg3: memref<8x128xf32, #tpu.memory_space<vmem>>, %arg4: memref<128x128xf32, #tpu.memory_space<vmem>>, %arg5: memref<1x1x128xf32, #tpu.memory_space<vmem>>, %arg6: memref<1x128xf32, #tpu.memory_space<vmem>>) attributes {dimension_semantics = [#tpu.dimension_semantics<parallel>, #tpu.dimension_semantics<arbitrary>], iteration_bounds = array<i64: 2, 1>, scalar_prefetch = 0 : i64, scratch_operands = 1 : i64, tpu.core_type = #tpu.core_type<tc>, window_params = [{transform_indices = @transform_0, window_bounds = array<i64: 8, 1>}, {transform_indices = @transform_1, window_bounds = array<i64: 8, 128>}, {pipeline_mode = #tpu.pipeline_mode<synchronous>, transform_indices = @transform_2, window_bounds = array<i64: 128, 128>}, {transform_indices = @transform_3, window_bounds = array<i64: 1, 1, 128>}]} {
    %c0_i32 = arith.constant 0 : i32
    %0 = arith.cmpi eq, %arg1, %c0_i32 : i32
    %1 = arith.extui %0 : i1 to i32
    %c0_i32_0 = arith.constant 0 : i32
    %2 = arith.cmpi ne, %1, %c0_i32_0 : i32
    scf.if %2 {
      %cst_14 = arith.constant 0.000000e+00 : f32
      %34 = vector.broadcast %cst_14 : f32 to vector<1x128xf32>
      %c0_15 = arith.constant 0 : index
      %c0_16 = arith.constant 0 : index
      %35 = vector.load %arg6[%c0_15, %c0_16] : memref<1x128xf32, #tpu.memory_space<vmem>>, vector<1x128xf32>
      tpu.vector_store %arg6[%c0_15, %c0_16], %34 {strides = array<i32>} : memref<1x128xf32, #tpu.memory_space<vmem>>, vector<1x128xf32>,
      %cst_17 = arith.constant 0.000000e+00 : f32
      %36 = vector.broadcast %cst_17 : f32 to vector<1x1x128xf32>
      %c0_18 = arith.constant 0 : index
      %c0_19 = arith.constant 0 : index
      %c0_20 = arith.constant 0 : index
      %37 = vector.load %arg5[%c0_18, %c0_19, %c0_20] : memref<1x1x128xf32, #tpu.memory_space<vmem>>, vector<1x1x128xf32>
      tpu.vector_store %arg5[%c0_18, %c0_19, %c0_20], %36 {strides = array<i32>} : memref<1x1x128xf32, #tpu.memory_space<vmem>>, vector<1x1x128xf32>,
    } else {
    }
    %c0 = arith.constant 0 : index
    %c0_1 = arith.constant 0 : index
    %3 = vector.load %arg3[%c0, %c0_1] : memref<8x128xf32, #tpu.memory_space<vmem>>, vector<8x128xf32>
    %c0_2 = arith.constant 0 : index
    %c0_3 = arith.constant 0 : index
    %4 = vector.load %arg2[%c0_2, %c0_3] : memref<8x1xi32, #tpu.memory_space<vmem>>, vector<8x1xi32>
    %5 = tpu.iota {dimensions = array<i32: 1>} : vector<8x128xi32>
    %6 = vector.broadcast %4 : vector<8x1xi32> to vector<8x128xi32>
    %7 = arith.cmpi eq, %6, %5 : vector<8x128xi32>
    %8 = arith.extui %7 : vector<8x128xi1> to vector<8x128xi32>
    %9 = arith.sitofp %8 : vector<8x128xi32> to vector<8x128xf32>
    %c0_4 = arith.constant 0 : index
    %c0_5 = arith.constant 0 : index
    %10 = vector.load %arg4[%c0_4, %c0_5] : memref<128x128xf32, #tpu.memory_space<vmem>>, vector<128x128xf32>
    %cst = arith.constant dense<0.000000e+00> : vector<8x128xf32>
    %11 = tpu.matmul %9, %10, %cst {dimension_numbers = #tpu.dot_dimension_numbers<[1], [0], [0], [1], [0, 0, 1, 1], [], []>, precision = #tpu.contract_precision<fp32>} : vector<8x128xf32>, vector<128x128xf32>, vector<8x128xf32> -> vector<8x128xf32>
    %12 = arith.subf %3, %11 : vector<8x128xf32>
    %13 = arith.mulf %12, %12 : vector<8x128xf32>
    %c1_i32 = arith.constant 1 : i32
    %14 = arith.muli %arg0, %c1_i32 : i32
    %15 = arith.addi %14, %arg1 : i32
    %c8_i32 = arith.constant 8 : i32
    %16 = arith.muli %15, %c8_i32 : i32
    %17 = tpu.iota {dimensions = array<i32: 0>} : vector<8x1xi32>
    %18 = vector.broadcast %16 : i32 to vector<8x1xi32>
    %19 = arith.addi %18, %17 : vector<8x1xi32>
    %c10_i32 = arith.constant 10 : i32
    %20 = vector.broadcast %c10_i32 : i32 to vector<8x1xi32>
    %21 = arith.cmpi slt, %19, %20 : vector<8x1xi32>
    %cst_6 = arith.constant 0.000000e+00 : f32
    %22 = vector.shape_cast %21 : vector<8x1xi1> to vector<8x1xi1>
    %23 = vector.broadcast %22 : vector<8x1xi1> to vector<8x128xi1>
    %24 = vector.broadcast %cst_6 : f32 to vector<8x128xf32>
    %25 = arith.select %23, %13, %24 : vector<8x128xi1>, vector<8x128xf32>
    %c0_7 = arith.constant 0 : index
    %c0_8 = arith.constant 0 : index
    %26 = vector.load %arg6[%c0_7, %c0_8] : memref<1x128xf32, #tpu.memory_space<vmem>>, vector<1x128xf32>
    %cst_9 = arith.constant dense<0.000000e+00> : vector<128xf32>
    %27 = vector.multi_reduction <add>, %25, %cst_9 [0] : vector<8x128xf32> to vector<128xf32>
    %28 = vector.shape_cast %27 : vector<128xf32> to vector<1x128xf32>
    %29 = arith.addf %26, %28 : vector<1x128xf32>
    %c0_10 = arith.constant 0 : index
    %c0_11 = arith.constant 0 : index
    %30 = vector.load %arg6[%c0_10, %c0_11] : memref<1x128xf32, #tpu.memory_space<vmem>>, vector<1x128xf32>
    tpu.vector_store %arg6[%c0_10, %c0_11], %29 {strides = array<i32>} : memref<1x128xf32, #tpu.memory_space<vmem>>, vector<1x128xf32>,
    %c0_i32_12 = arith.constant 0 : i32
    %31 = arith.cmpi eq, %arg1, %c0_i32_12 : i32
    %32 = arith.extui %31 : i1 to i32
    %c0_i32_13 = arith.constant 0 : i32
    %33 = arith.cmpi ne, %32, %c0_i32_13 : i32
    scf.if %33 {
      %c0_14 = arith.constant 0 : index
      %c0_15 = arith.constant 0 : index
      %34 = vector.load %arg6[%c0_14, %c0_15] : memref<1x128xf32, #tpu.memory_space<vmem>>, vector<1x128xf32>
      %35 = vector.shape_cast %34 : vector<1x128xf32> to vector<1x1x128xf32>
      %cst_16 = arith.constant dense<0.000000e+00> : vector<1xf32>
      %36 = vector.multi_reduction <add>, %35, %cst_16 [1, 2] : vector<1x1x128xf32> to vector<1xf32>
      %37 = vector.shape_cast %36 : vector<1xf32> to vector<1x1x1xf32>
      %38 = vector.extract %37[0, 0, 0] : f32 from vector<1x1x1xf32>
      %39 = vector.broadcast %38 : f32 to vector<1x1x128xf32>
      %c0_17 = arith.constant 0 : index
      %c0_18 = arith.constant 0 : index
      %c0_19 = arith.constant 0 : index
      %40 = vector.load %arg5[%c0_17, %c0_18, %c0_19] : memref<1x1x128xf32, #tpu.memory_space<vmem>>, vector<1x1x128xf32>
      tpu.vector_store %arg5[%c0_17, %c0_18, %c0_19], %39 {strides = array<i32>} : memref<1x1x128xf32, #tpu.memory_space<vmem>>, vector<1x1x128xf32>,
    } else {
    }
    return
  }
  func.func @transform_0(%arg0: i32, %arg1: i32) -> (i32, i32) {
    %c1_i32 = arith.constant 1 : i32
    %0 = arith.muli %arg0, %c1_i32 : i32
    %1 = arith.addi %0, %arg1 : i32
    %c0_i32 = arith.constant 0 : i32
    %c0_i32_0 = arith.constant 0 : i32
    return %1, %c0_i32 : i32, i32
  }
  func.func @transform_1(%arg0: i32, %arg1: i32) -> (i32, i32) {
    %c1_i32 = arith.constant 1 : i32
    %0 = arith.muli %arg0, %c1_i32 : i32
    %1 = arith.addi %0, %arg1 : i32
    %c0_i32 = arith.constant 0 : i32
    %c0_i32_0 = arith.constant 0 : i32
    return %1, %c0_i32 : i32, i32
  }
  func.func @transform_2(%arg0: i32, %arg1: i32) -> (i32, i32) {
    %c0_i32 = arith.constant 0 : i32
    %c0_i32_0 = arith.constant 0 : i32
    %c0_i32_1 = arith.constant 0 : i32
    return %c0_i32, %c0_i32_0 : i32, i32
  }
  func.func @transform_3(%arg0: i32, %arg1: i32) -> (i32, i32, i32) {
    %c0_i32 = arith.constant 0 : i32
    %c0_i32_0 = arith.constant 0 : i32
    %c0_i32_1 = arith.constant 0 : i32
    return %arg0, %c0_i32, %c0_i32_0 : i32, i32, i32
  }
}

</mosaic_0001>

<bundles_post_ra>
// kernel: tpu_custom_call.1
= control target key start
LH: loop header
LB: loop body
LE: loop exit
PB: predicated region body
PF: predicated region fallthrough
CT: control target
= control target key end

     0   :  { %8 = vsyncpa [#allocation4], 0  ;;  %s1305_s0 = inlined_call_operand.vmem [shape: s32[16,1], index: 0, kind: input, shape index: {}]   ;;  %s1306_s1 = inlined_call_operand.vmem [shape: f32[16,128], index: 1, kind: input, shape index: {}]   ;;  %s1307_s2 = inlined_call_operand.hbm [shape: f32[128,128], index: 2, kind: input, shape index: {}]   ;;  %s1308_s3 = inlined_call_operand.hbm [shape: f32[2,1,128], index: 3, kind: output, shape index: {}]  }
   0x1   :  { %9 = vsyncpa [#allocation5], 0 }
   0x2   :  { %11 = vsyncpa [#allocation5 + $0x1], 0  ;;  %s966_s12 = smov 0   ;;  %s968_s13 = smov 0  }
   0x3   :  { %s970_s14 = smov 0   ;;  %s972_s15 = smov 0  }
   0x4   :  { %s974_s16 = smov 0   ;;  %s976_s17 = smov 0  }
   0x5 LB: > { %s736_s18 = sadd.s32 4294967295, %s938_s17   ;;  %s737_s19 = sadd.s32 4294967294, %s938_s17   ;;  %s938_s17 = sphi %s976_s17, %s17_s17   ;;  %s934_s16 = sphi %s974_s16, %s1315_s16   ;;  %s930_s15 = sphi %s972_s15, %s1314_s15   ;;  %s926_s14 = sphi %s970_s14, %s1313_s14   ;;  %s922_s13 = sphi %s968_s13, %s1312_s13   ;;  %s918_s12 = sphi %s966_s12, %s1311_s12  }
   0x6   : > { %s29_s20 = sadd.s32 1, %s934_s16  ;;  %s113_s21 = sadd.s32 1, %s926_s14 }
   0x7   : > { %p31_p0 = scmp.ge.s32.totalorder %s29_s20, 2  ;;  %p123_p1 = scmp.ne.s32.totalorder %s926_s14, %s922_s13 }
   0x8   : > { %p124_p2 = scmp.eq.s32.totalorder %s736_s18, 1  ;;  %p129_p3 = scmp.ne.s32.totalorder %s922_s13, %s918_s12 }
   0x9   : > { %s1317_s20 = smov (%p31_p0, %s29_s20), 0  ;;  %p130_p5 = scmp.eq.s32.totalorder %s737_s19, 1 }
   0xa   : > { %p1006_p4 = por %p124_p2, %p123_p1  ;;  %s110_s23 = ssub.s32 %s934_s16, %s1317_s20 }
   0xb   : > { %p738_p6 = scmp.ge.s32.totalorder %s938_s17, 1  ;;  %p111_p7 = scmp.eq.s32.totalorder %s110_s23, 0 }
   0xc   : > { %p1013_p8 = por %p130_p5, %p129_p3  ;;  %p137_p9 = scmp.lt.s32.totalorder %s938_s17, 3 }
   0xd   : > { %s1019_s25 = scalar_select %p111_p7, %s926_s14, %s113_s21  }
   0xe   : > { %p138_p10 = pnand %p738_p6, %p137_p9  ;;  %p768_p11 = scmp.eq.s32.totalorder %s736_s18, 0 }
   0xf   : > { %s148_s28 = sshll.u32 %s1307_s2, 4  ;;  %s940_s29 = smov [#allocation3]   ;;  %s149_s28 = int_to_ptr.hbm [resolvable:$true] %s148_s28 }
  0x10   : > { %p760_p12 = pneg %p138_p10  ;;  %s150_s30 = sshll.u32 %s940_s29, 4  ;;  %s151_s30 = int_to_ptr.vmem [resolvable:$true] %s150_s30 }
  0x11   : > { %s941_s4 = smov 128   ;;  %s942_s5 = smov 8  }
  0x12   : > { %p761_p13 = pnand %p768_p11, %p760_p12  ;;  %184 = sbr.rel (%p138_p10) target bundleno = 504 (0x1f8), region = 32 }
  0x14   : > { %763 = dma.hbm_to_vmem [thread:$0]  (!%p761_p13), %s149_s28, 2048, %s151_s30, [#allocation4], %s941_s4, %s941_s4, %s942_s5  }
  0x17   : > { %909 = dma.done.wait (%p768_p11), [#allocation4], 2048  }
  0x18   : > { %911 = vsyncadd (%p768_p11), [#allocation4], 4294965248  ;;  %p214_p0 = scmp.lt.s32.totalorder %s930_s15, 1  ;;  %v943_v0 = vmov 0   ;;  %v256_v2 = vld [vmem:[#allocation3 + $0x78] sm:$0xff]  ;;  %v255_v4 = vld [vmem:[#allocation3 + $0x70] sm:$0xff]  ;;  %s645_s29 = scalar_lea.hbm %s1308_s3, %s930_s15 }
  0x19   : > { %825 = vset.pattern.permute.xlu0 %v943_v0  ;;  %v1034_v3 = vand.u32 4294901760, %v256_v2  ;;  %v254_v5 = vld [vmem:[#allocation3 + $0x68] sm:$0xff]  ;;  %v253_v6 = vld [vmem:[#allocation3 + $0x60] sm:$0xff]  ;;  %v1036_v7 = vand.u32 4294901760, %v255_v4  ;;  %v252_v10 = vld [vmem:[#allocation3 + $0x58] sm:$0xff]  ;;  %s749_s11 = sshll.u32 %s930_s15, 3 }
  0x1a   : > { %s1026_s6 = scalar_select %p214_p0, %s930_s15, 1  ;;  %v1038_v8 = vand.u32 4294901760, %v254_v5  ;;  %v1040_v9 = vand.u32 4294901760, %v253_v6  ;;  %v251_v11 = vld [vmem:[#allocation3 + $0x50] sm:$0xff]  ;;  %v250_v12 = vld [vmem:[#allocation3 + $0x48] sm:$0xff]  ;;  %v1045_v14 = vand.u32 4294901760, %v252_v10 }
  0x1b   : > { %v1043_v13 = vsub.f32 %v256_v2, %v1034_v3  ;;  %258 = vmatpush.msra.mxu0 %v1034_v3  ;;  %v1048_v15 = vand.u32 4294901760, %v251_v11  ;;  %v1050_v16 = vand.u32 4294901760, %v250_v12  ;;  %v249_v17 = vld [vmem:[#allocation3 + $0x40] sm:$0xff]  ;;  %454 = vmatpush.msra.mxu3 %v1034_v3  ;;  %v1054_v18 = vsub.f32 %v255_v4, %v1036_v7  ;;  %v248_v34 = vld [vmem:[#allocation3 + $0x38] sm:$0xff]  ;;  %v247_v38 = vld [vmem:[#allocation3 + $0x30] sm:$0xff]  ;;  %s211_s23 = sand.u32 1, %s922_s13  }
  0x1c   : > { %s743_s7 = sshll.u32 %s1026_s6, 3  ;;  %v1057_v19 = vsub.f32 %v254_v5, %v1038_v8  ;;  %v1060_v20 = vsub.f32 %v253_v6, %v1040_v9  ;;  %v1062_v21 = vand.u32 4294901760, %v249_v17  ;;  %v1066_v23 = vsub.f32 %v252_v10, %v1045_v14  ;;  %v246_v39 = vld [vmem:[#allocation3 + $0x28] sm:$0xff]  ;;  %v245_v42 = vld [vmem:[#allocation3 + $0x20] sm:$0xff]  ;;  %v244_v49 = vld [vmem:[#allocation3 + $0x18] sm:$0xff]  ;;  %s212_s26 = scalar_lea.vmem [#allocation6], %s211_s23 }
  0x1d   : > { %s217_s10 = scalar_lea.vmem %s1305_s0, %s743_s7  ;;  %v300_v22 = vand.u32 4294901760, %v1043_v13  ;;  %v1069_v24 = vsub.f32 %v251_v11, %v1048_v15  ;;  %260 = vmatpush.msra.mxu0 %v1036_v7  ;;  %401 = vmatpush.msra.mxu2 %v1043_v13  ;;  %v306_v25 = vand.u32 4294901760, %v1054_v18  ;;  %v1077_v28 = vsub.f32 %v250_v12, %v1050_v16  ;;  %v243_v56 = vld [vmem:[#allocation3 + $0x10] sm:$0xff]  ;;  %v242_v62 = vld [vmem:[#allocation3 + $0x8] sm:$0xff]  ;;  %v241_v5 = vld [vmem:[#allocation3] sm:$0xff]  ;;  %s223_s21 = scalar_lea.vmem %s1306_s1, %s743_s7 }
  0x1e   : > { %v232_v1 = vld [vmem:[%s217_s10] sm:$0xff]  ;;  %v312_v26 = vand.u32 4294901760, %v1057_v19  ;;  %v318_v27 = vand.u32 4294901760, %v1060_v20  ;;  %456 = vmatpush.msra.mxu3 %v1036_v7  ;;  %v324_v30 = vand.u32 4294901760, %v1066_v23  ;;  %v1093_v33 = vsub.f32 %v249_v17, %v1062_v21  ;;  %s647_s30 = sshll.u32 %s212_s26, 4  ;;  %s649_s4 = sshll.u32 %s645_s29, 4  ;;  %s648_s30 = int_to_ptr.vmem [resolvable:$true] %s647_s30  ;;  %s650_s4 = int_to_ptr.hbm [resolvable:$true] %s649_s4 }
  0x1f   : > { %236 = vperm.xlu0 %825, %v232_v1   ;;  %v301_v29 = vsub.f32 %v1043_v13, %v300_v22  ;;  %262 = vmatpush.msra.mxu0 %v1038_v8  ;;  %v307_v31 = vsub.f32 %v1054_v18, %v306_v25  ;;  %v330_v37 = vand.u32 4294901760, %v1069_v24  ;;  %v336_v41 = vand.u32 4294901760, %v1077_v28  ;;  %s637_s6 = scalar_lea.sflag [#allocation5], %s211_s23  ;;  %s870_s7 = sshra.s32 %s650_s4, 4  ;;  %s871_s7 = int_to_ptr.hbm [resolvable:$true] %s870_s7 }
  0x20   : > { %404 = vmatpush.msra.mxu2 %v1054_v18  ;;  %v313_v32 = vsub.f32 %v1057_v19, %v312_v26  ;;  %458 = vmatpush.msra.mxu3 %v1038_v8  ;;  %v319_v36 = vsub.f32 %v1060_v20, %v318_v27  ;;  %v325_v44 = vsub.f32 %v1066_v23, %v324_v30  ;;  %v1107_v45 = vand.u32 4294901760, %v248_v34  ;;  %s872_s8 = scalar_lea.hbm %s871_s7, 1  ;;  %p877_p5 = scmp.lt.s32.totalorder %s871_s7, %s1308_s3 }
  0x21   : > { %v302_v35 = vand.u32 4294901760, %v301_v29  ;;  %264 = vmatpush.msra.mxu0 %v1040_v9  ;;  %v308_v40 = vand.u32 4294901760, %v307_v31  ;;  %v342_v46 = vand.u32 4294901760, %v1093_v33  ;;  %v1111_v47 = vand.u32 4294901760, %v247_v38  ;;  %p873_p1 = scmp.ne.s32.totalorder %s871_s7, %s872_s8 }
  0x22   : > { %407 = vmatpush.msra.mxu2 %v1057_v19  ;;  %460 = vmatpush.msra.mxu3 %v1040_v9  ;;  %v314_v43 = vand.u32 4294901760, %v313_v32  ;;  %v1113_v48 = vand.u32 4294901760, %v246_v39  ;;  %v320_v50 = vand.u32 4294901760, %v319_v36  ;;  %v331_v51 = vsub.f32 %v1069_v24, %v330_v37 }
  0x23   : > { %303 = vmatpush.msra.mxu1 %v302_v35  ;;  %266 = vmatpush.msra.mxu0 %v1045_v14  ;;  %v1121_v52 = vsub.f32 %v248_v34, %v1107_v45  ;;  %v1124_v53 = vand.u32 4294901760, %v245_v42  ;;  %v337_v54 = vsub.f32 %v1077_v28, %v336_v41  ;;  %v1130_v55 = vsub.f32 %v247_v38, %v1111_v47  ;;  %p874_p2 = pnand %p873_p1, %p1006_p4 }
  0x24   : > { %410 = vmatpush.msra.mxu2 %v1060_v20  ;;  %462 = vmatpush.msra.mxu3 %v1045_v14  ;;  %v326_v57 = vand.u32 4294901760, %v325_v44  ;;  %v1136_v59 = vsub.f32 %v246_v39, %v1113_v48  ;;  %v1139_v60 = vand.u32 4294901760, %v244_v49  ;;  %v343_v61 = vsub.f32 %v1093_v33, %v342_v46 }
  0x25   : > { %309 = vmatpush.msra.mxu1 %v308_v40  ;;  %268 = vmatpush.msra.mxu0 %v1048_v15  ;;  %v348_v58 = vand.u32 4294901760, %v1121_v52  ;;  %v332_v63 = vand.u32 4294901760, %v331_v51  ;;  %v354_v0 = vand.u32 4294901760, %v1130_v55  ;;  %v1148_v1 = vsub.f32 %v245_v42, %v1124_v53  ;;  %p875_p3 = pneg %p874_p2 }
  0x26   : > { %413 = vmatpush.msra.mxu2 %v1066_v23  ;;  %464 = vmatpush.msra.mxu3 %v1048_v15  ;;  %v1151_v2 = vand.u32 4294901760, %v243_v56  ;;  %v338_v4 = vand.u32 4294901760, %v337_v54  ;;  %v360_v10 = vand.u32 4294901760, %v1136_v59  ;;  %v1160_v11 = vsub.f32 %v244_v49, %v1139_v60 }
  0x27   : > { %315 = vmatpush.msra.mxu1 %v314_v43  ;;  %270 = vmatpush.msra.mxu0 %v1050_v16  ;;  %v349_v6 = vsub.f32 %v1121_v52, %v348_v58  ;;  %v1163_v12 = vand.u32 4294901760, %v242_v62  ;;  %v344_v17 = vand.u32 4294901760, %v343_v61  ;;  %v355_v29 = vsub.f32 %v1130_v55, %v354_v0 }
  0x28   : > { %416 = vmatpush.msra.mxu2 %v1069_v24  ;;  %466 = vmatpush.msra.mxu3 %v1050_v16  ;;  %v366_v31 = vand.u32 4294901760, %v1148_v1  ;;  %v1172_v32 = vsub.f32 %v243_v56, %v1151_v2  ;;  %v1175_v34 = vand.u32 4294901760, %v241_v5  ;;  %v361_v36 = vsub.f32 %v1136_v59, %v360_v10 }
  0x29   : > { %321 = vmatpush.msra.mxu1 %v320_v50  ;;  %272 = vmatpush.msra.mxu0 %v1062_v21  ;;  %v350_v35 = vand.u32 4294901760, %v349_v6  ;;  %v372_v38 = vand.u32 4294901760, %v1160_v11  ;;  %v1184_v39 = vsub.f32 %v242_v62, %v1163_v12  ;;  %v356_v40 = vand.u32 4294901760, %v355_v29 }
  0x2a   : > { %419 = vmatpush.msra.mxu2 %v1077_v28  ;;  %468 = vmatpush.msra.mxu3 %v1062_v21  ;;  %v367_v42 = vsub.f32 %v1148_v1, %v366_v31  ;;  %v378_v43 = vand.u32 4294901760, %v1172_v32  ;;  %v1194_v44 = vsub.f32 %v241_v5, %v1175_v34  ;;  %v362_v49 = vand.u32 4294901760, %v361_v36 }
  0x2b   : > { %327 = vmatpush.msra.mxu1 %v326_v57  ;;  %274 = vmatpush.msra.mxu0 %v1107_v45  ;;  %v373_v50 = vsub.f32 %v1160_v11, %v372_v38  ;;  %v384_v51 = vand.u32 4294901760, %v1184_v39  ;;  %v945_v13 = vmov 1.0   ;;  %v604_v28 = vstv %s749_s11  ;;  %s876_s11 = scalar_lea.hbm %s1308_s3, 2 }
  0x2c   : > { %422 = vmatpush.msra.mxu2 %v1093_v33  ;;  %470 = vmatpush.msra.mxu3 %v1107_v45  ;;  %v368_v54 = vand.u32 4294901760, %v367_v42  ;;  %v379_v56 = vsub.f32 %v1172_v32, %v378_v43  ;;  %v390_v57 = vand.u32 4294901760, %v1194_v44  ;;  %vm623_vm2 = vcmask 1040384   ;;  %p878_p6 = scmp.lt.s32.totalorder %s876_s11, %s872_s8 }
  0x2d   : > { %333 = vmatpush.msra.mxu1 %v332_v63  ;;  %276 = vmatpush.msra.mxu0 %v1111_v47  ;;  %v374_v61 = vand.u32 4294901760, %v373_v50  ;;  %v385_v62 = vsub.f32 %v1184_v39, %v384_v51 }
  0x2e   : > { %425 = vmatpush.msra.mxu2 %v1121_v52  ;;  %472 = vmatpush.msra.mxu3 %v1111_v47  ;;  %v380_v63 = vand.u32 4294901760, %v379_v56  ;;  %p879_p7 = por %p878_p6, %p877_p5 }
  0x2f   : > { %339 = vmatpush.msra.mxu1 %v338_v4  ;;  %278 = vmatpush.msra.mxu0 %v1113_v48  ;;  %v391_v4 = vsub.f32 %v1194_v44, %v390_v57  ;;  %v386_v5 = vand.u32 4294901760, %v385_v62 }
  0x30   : > { %428 = vmatpush.msra.mxu2 %v1130_v55  ;;  %474 = vmatpush.msra.mxu3 %v1113_v48  ;;  %p880_p9 = pnand %p879_p7, %p875_p3 }
  0x31   : > { %345 = vmatpush.msra.mxu1 %v344_v17  ;;  %280 = vmatpush.msra.mxu0 %v1124_v53  ;;  %v392_v6 = vand.u32 4294901760, %v391_v4 }
  0x32   : > { %431 = vmatpush.msra.mxu2 %v1136_v59  ;;  %476 = vmatpush.msra.mxu3 %v1124_v53 }
  0x33   : > { %351 = vmatpush.msra.mxu1 %v350_v35  ;;  %282 = vmatpush.msra.mxu0 %v1139_v60 }
  0x34   : > { %434 = vmatpush.msra.mxu2 %v1148_v1  ;;  %478 = vmatpush.msra.mxu3 %v1139_v60 }
  0x35   : > { %357 = vmatpush.msra.mxu1 %v356_v40  ;;  %284 = vmatpush.msra.mxu0 %v1151_v2 }
  0x36   : > { %437 = vmatpush.msra.mxu2 %v1160_v11  ;;  %480 = vmatpush.msra.mxu3 %v1151_v2 }
  0x37   : > { %363 = vmatpush.msra.mxu1 %v362_v49  ;;  %286 = vmatpush.msra.mxu0 %v1163_v12 }
  0x38   : > { %440 = vmatpush.msra.mxu2 %v1172_v32  ;;  %482 = vmatpush.msra.mxu3 %v1163_v12 }
  0x39   : > { %369 = vmatpush.msra.mxu1 %v368_v54  ;;  %288 = vmatpush.msra.mxu0 %v1175_v34 }
  0x3a   : > { %443 = vmatpush.msra.mxu2 %v1184_v39  ;;  %484 = vmatpush.msra.mxu3 %v1175_v34 }
  0x3b   : > { %495 = vmatpush.msrb.mxu0 %v300_v22  ;;  %375 = vmatpush.msra.mxu1 %v374_v61 }
  0x3c   : > { %446 = vmatpush.msra.mxu2 %v1194_v44 }
  0x3d   : > { %499 = vmatpush.msrb.mxu0 %v306_v25  ;;  %381 = vmatpush.msra.mxu1 %v380_v63 }
  0x3f   : > { %503 = vmatpush.msrb.mxu0 %v312_v26  ;;  %387 = vmatpush.msra.mxu1 %v386_v5 }
  0x41   : > { %507 = vmatpush.msrb.mxu0 %v318_v27  ;;  %393 = vmatpush.msra.mxu1 %v392_v6 }
  0x43   : > { %562 = vmatpush.msrb.mxu1 %v1034_v3  ;;  %511 = vmatpush.msrb.mxu0 %v324_v30  ;;  %v944_v3 = vmov 0.0  }
  0x44   : > { %229 = vst [vmem:[#allocation2] sm:$0x1] %v944_v3 }
  0x45   : > { %564 = vmatpush.msrb.mxu1 %v1036_v7  ;;  %515 = vmatpush.msrb.mxu0 %v330_v37  ;;  %v233_v7 = vlaneseq  ;;  %v231_v37 = vld [vmem:[%s223_s21] sm:$0xff]  ;;  %230 = vst [vmem:[%s212_s26] sm:$0x1] %v944_v3 }
  0x47   : > { %566 = vmatpush.msrb.mxu1 %v1038_v8  ;;  %519 = vmatpush.msrb.mxu0 %v336_v41  ;;  %v234_v8 = vand.u32 127, %v233_v7  ;;  %v603_v25 = vshrl.u32 %v233_v7, 7 }
  0x49   : > { %568 = vmatpush.msrb.mxu1 %v1040_v9  ;;  %523 = vmatpush.msrb.mxu0 %v342_v46 }
  0x4b   : > { %570 = vmatpush.msrb.mxu1 %v1045_v14  ;;  %527 = vmatpush.msrb.mxu0 %v348_v58 }
  0x4d   : > { %572 = vmatpush.msrb.mxu1 %v1048_v15  ;;  %531 = vmatpush.msrb.mxu0 %v354_v0  ;;  %v610_v0 = vld [vmem:[#allocation2] sm:$0x1] }
  0x4f   : > { %574 = vmatpush.msrb.mxu1 %v1050_v16  ;;  %535 = vmatpush.msrb.mxu0 %v360_v10 }
  0x51   : > { %576 = vmatpush.msrb.mxu1 %v1062_v21  ;;  %539 = vmatpush.msrb.mxu0 %v366_v31 }
  0x53   : > { %578 = vmatpush.msrb.mxu1 %v1107_v45  ;;  %543 = vmatpush.msrb.mxu0 %v372_v38  ;;  %v605_v45 = vadd.s32 %v604_v28, %v603_v25 }
  0x55   : > { %580 = vmatpush.msrb.mxu1 %v1111_v47  ;;  %547 = vmatpush.msrb.mxu0 %v378_v43  ;;  %vm606_vm1 = vcmp.lt.s32.totalorder %v605_v45, 10 }
  0x57   : > { %582 = vmatpush.msrb.mxu1 %v1113_v48  ;;  %551 = vmatpush.msrb.mxu0 %v384_v51 }
  0x59   : > { %584 = vmatpush.msrb.mxu1 %v1124_v53  ;;  %555 = vmatpush.msrb.mxu0 %v390_v57 }
  0x5b   : > { %586 = vmatpush.msrb.mxu1 %v1139_v60 }
  0x5d   : > { %588 = vmatpush.msrb.mxu1 %v1151_v2 }
  0x5f   : > { %590 = vmatpush.msrb.mxu1 %v1163_v12 }
  0x61   : > { %592 = vmatpush.msrb.mxu1 %v1175_v34 }
  0x91   : > { %v237_v9 = vpop.permute.xlu0 %236 }
  0x92   : > { %vm238_vm0 = vcmp.eq.s32.totalorder %v237_v9, %v234_v8 }
  0x93   : > { %746 = vmatmul.msk.f32.vlgmr.msra.gmra.mxu1 %vm238_vm0, %v945_v13  ;;  %v745_v14 = vsel %vm238_vm0, 1.0, %v944_v3 }
  0x94   : > { %v290_v15 = vsub.f32 %v745_v14, %v745_v14 }
  0x96   : > { %449 = vmatmul.f32.vlgmr.msra.gmra.mxu2 %v290_v15  ;;  %v291_v16 = vand.u32 4294901760, %v290_v15 }
  0x98   : > { %488 = vmatmul.f32.vlgmr.msra.gmra.mxu3 %v291_v16  ;;  %v292_v18 = vsub.f32 %v290_v15, %v291_v16 }
  0x9a   : > { %v293_v19 = vand.u32 4294901760, %v292_v18 }
  0x9b   : > { %748 = vmatmul.msk.f32.vlgmr.msrb.gmra.mxu1 %vm238_vm0, %v945_v13 }
  0x9c   : > { %294 = vmatmul.f32.vlgmr.msra.gmra.mxu0 %v293_v19 }
  0xa4   : > { %747 = vmatmul.msk.f32.vlgmr.msrb.gmra.mxu0 %vm238_vm0, %v945_v13 }
 0x110   : > { %v396_v20 = vpop.f32.mrf.mxu1 }
 0x118   : > { %v595_v41 = vpop.f32.mrf.mxu1 }
 0x119   : > { %v295_v21 = vpop.f32.mrf.mxu0  ;;  %v450_v23 = vpop.f32.mrf.mxu2 }
 0x11a   : > { %v397_v22 = vadd.f32 %v396_v20, %v295_v21 }
 0x11b   : > { %v489_v26 = vpop.f32.mrf.mxu3 }
 0x11c   : > { %v451_v24 = vadd.f32 %v450_v23, %v397_v22 }
 0x11e   : > { %v490_v27 = vadd.f32 %v489_v26, %v451_v24 }
 0x121   : > { %v558_v30 = vpop.f32.mrf.mxu0 }
 0x122   : > { %v559_v33 = vadd.f32 %v558_v30, %v490_v27 }
 0x124   : > { %v596_v46 = vadd.f32 %v595_v41, %v559_v33 }
 0x126   : > { %v598_v47 = vsub.f32 %v231_v37, %v596_v46 }
 0x128   : > { %v599_v48 = vmul.f32 %v598_v47, %v598_v47 }
 0x12a   : > { %v609_v52 = vsel %vm606_vm1, %v599_v48, 0.0 }
 0x12b   : > { %v611_v53 = vrot.slane %v609_v52, 4 }
 0x12d   : > { %v612_v55 = vadd.f32 %v611_v53, %v609_v52 }
 0x12f   : > { %v613_v58 = vrot.slane %v612_v55, 2 }
 0x131   : > { %v614_v59 = vadd.f32 %v613_v58, %v612_v55 }
 0x133   : > { %v615_v60 = vrot.slane %v614_v59, 1 }
 0x135   : > { %v616_v1 = vadd.f32 %v615_v60, %v614_v59 }
 0x137   : > { %v617_v2 = vadd.f32 %v616_v1, %v610_v0 }
 0x139   : > { %618 = vst [vmem:[#allocation2] sm:$0x1] %v617_v2 }
 0x140   : > { %v622_v10 = vld [vmem:[#allocation2] sm:$0x1] }
 0x141   : > { %v624_v11 = vsel %vm623_vm2, %v622_v10, 0.0 }
 0x142   : > { %625 = vadd.xlane.f32.xlu0 %v624_v11 }
 0x1b5   : > { %v626_v12 = vpop.xlane.xlu0 %625 }
 0x1b6   : > { %v627_v17 = vrot.slane %v626_v12, 4 }
 0x1b8   : > { %v628_v29 = vadd.f32 %v627_v17, %v626_v12 }
 0x1ba   : > { %v629_v31 = vrot.slane %v628_v29, 2 }
 0x1bc   : > { %v630_v32 = vadd.f32 %v629_v31, %v628_v29 }
 0x1be   : > { %v631_v34 = vrot.slane %v630_v32, 1 }
 0x1c0   : > { %v632_v35 = vadd.f32 %v631_v34, %v630_v32 }
 0x1c2   : > { %752 = vpush %v632_v35 }
 0x1f3   : > { %s753_s5 = spop %752 }
 0x1f4   : > { %v634_v36 = vstv %s753_s5 }
 0x1f5   : > { %635 = vst [vmem:[%s212_s26] sm:$0x1] %v634_v36 }
 0x1f6   : > { %883 = shalt.err (!%p880_p9)
}
 0x1f7   : > { %758 = dma.vmem_to_hbm [thread:$0]  (%p1006_p4), %s648_s30, 16, %s650_s4, %s637_s6  }
 0x1f8 PF: > { %p770_p10 = scmp.ge.s32.totalorder %s938_s17, 2  ;;  %s661_s19 = sand.u32 1, %s918_s12  }
 0x1f9   : > { %s662_s21 = scalar_lea.sflag [#allocation5], %s661_s19 }
 0x1fa   : > { %p765_p11 = pnand %p770_p10, %p1013_p8 }
 0x1fc   : > { %p766_p12 = pneg %p765_p11 }
 0x1fe   : > { %913 = dma.done.wait (%p766_p12), %s662_s21, 16  }
 0x1ff   : > { %915 = vsyncadd (%p766_p12), %s662_s21, 4294967280  ;;  %s17_s17 = sadd.s32 1, %s938_s17   ;;  %s1311_s12 = smov %s922_s13 }
 0x200   : > { %p14_p13 = scmp.ge.s32.totalorder %s17_s17, 4   ;;  %s1312_s13 = smov %s926_s14 }
 0x201   : > { %s1313_s14 = smov %s1019_s25  ;;  %s1314_s15 = smov %s934_s16 }
 0x202   : > { %s1315_s16 = smov %s1317_s20  ;;  %16 = sbr.rel (!%p14_p13) target bundleno = 5 (0x5), region = 83 }
 0x207   :  { %667 = vsyncpa [#allocation4], 1 }
 0x208   :  { %669 = vsyncpa [#allocation4 + $0x1], 1 }
 0x209   :  { %670 = vsyncpa [#allocation5], 1 }
 0x20a   :  { %672 = vsyncpa [#allocation5 + $0x1], 1 }

</bundles_post_ra>
